<compile_context>
chip_gen: v6e
topology: v6e:2x2x1
jax: 0.10.0
libtpu: 0.0.40
codegen_flags: <defaults>
</compile_context>

<pallas_src>
import jax
import jax.numpy as jnp
from jax.experimental import pallas as pl
from jax.experimental.pallas import tpu as pltpu


def _default_tile_and_limit():
    """Per-generation defaults: (tile_bytes, vmem_limit_bytes)."""
    tile = 8 * 1024 * 1024        # good for v5e/v6e (near HBM roofline)
    limit = 32 * 1024 * 1024
    try:
        vmem = int(pltpu.get_tpu_info().vmem_capacity_bytes)
        if vmem <= 96 * 1024 * 1024:      # v7x-class part: 64 MiB VMEM / TC
            tile = 14 * 1024 * 1024       # amortize ~0.35us/step at 3.2 TB/s
            limit = 44 * 1024 * 1024
    except Exception:
        pass
    return tile, limit


def channel_attention(x, w1, w2, *, tile_bytes=None, vmem_limit_bytes=None):
    """x: (B, C, H, W) NCHW; w1: (hidden, C) = fc1.weight; w2: (C, hidden) = fc2.weight.
    Returns the sigmoid channel-attention map of shape (B, C, 1, 1)."""
    B, C, H, W = x.shape
    hidden = w1.shape[0]
    HW = H * W
    x2 = x.reshape(B, C, HW)

    default_tile, default_limit = _default_tile_and_limit()
    if tile_bytes is None:
        tile_bytes = default_tile
    if vmem_limit_bytes is None:
        vmem_limit_bytes = default_limit

    # --- choose the spatial tile T (lane axis, multiple of 128) -------------
    itemsize = jnp.dtype(x.dtype).itemsize
    budget_elems = max(tile_bytes // itemsize, 128)
    t_budget = max(((budget_elems // max(C, 1)) // 128) * 128, 128)

    if HW <= t_budget:
        # whole spatial extent fits in one block; block dim == full array dim
        T, num_k = HW, 1
    else:
        T = t_budget
        if HW % T != 0:
            # Prefer a multiple of 128 near the budget that divides HW exactly
            # (no masking needed); accept down to half the budget.
            lo = max(t_budget // 2, 127)
            for cand in range(t_budget, lo, -128):
                if HW % cand == 0:
                    T = cand
                    break
        num_k = pl.cdiv(HW, T)
    ragged = (num_k * T != HW)     # last tile fetches OOB lanes -> mask both reductions
    inv_hw = 1.0 / float(HW)

    # Raise the scoped-VMEM limit to cover the actual double-buffered block
    # (guards the 128-lane floor blowing past the limit for very large C).
    block_bytes = C * T * itemsize
    needed = (2 * block_bytes                      # x double buffer
              + 4 * hidden * C * 4                 # w1 + w2, double buffered
              + 2 * C * 4 + (1 << 20))             # scratch / output / margin
    vmem_limit_bytes = int(max(vmem_limit_bytes, needed))

    def kernel(x_ref, w1_ref, w2_ref, o_ref, sum_ref, max_ref):
        k = pl.program_id(1)

        @pl.when(k == 0)
        def _():
            sum_ref[...] = jnp.zeros(sum_ref.shape, sum_ref.dtype)
            max_ref[...] = jnp.full(max_ref.shape, -jnp.inf, max_ref.dtype)

        xt = x_ref[0].astype(jnp.float32)                           # (C, T)

        def update_unmasked():
            sum_ref[...] += jnp.sum(xt, axis=-1, keepdims=True)     # (C, 1)
            max_ref[...] = jnp.maximum(
                max_ref[...], jnp.max(xt, axis=-1, keepdims=True))

        def update_masked():
            # OOB lanes of the auto-fetched edge block are NOT guaranteed
            # zero -> mask both the sum and the max.
            lane = jax.lax.broadcasted_iota(jnp.int32, xt.shape, 1)
            valid = (k * T + lane) < HW
            sum_ref[...] += jnp.sum(
                jnp.where(valid, xt, 0.0), axis=-1, keepdims=True)
            max_ref[...] = jnp.maximum(
                max_ref[...],
                jnp.max(jnp.where(valid, xt, -jnp.inf), axis=-1, keepdims=True))

        def finalize():
            avg = sum_ref[...] * inv_hw                             # (C, 1)
            pooled = jnp.concatenate([avg, max_ref[...]], axis=-1)  # (C, 2)
            w1f = w1_ref[...].astype(jnp.float32)                   # (hidden, C)
            w2f = w2_ref[...].astype(jnp.float32)                   # (C, hidden)
            # fused shared MLP: one fc1 dot and one fc2 dot for both branches
            h = jnp.maximum(
                jnp.dot(w1f, pooled, preferred_element_type=jnp.float32), 0.0)
            o2 = jnp.dot(w2f, h, preferred_element_type=jnp.float32)   # (C, 2)
            out = o2[:, 0:1] + o2[:, 1:2]                           # (C, 1)
            o_ref[0] = (1.0 / (1.0 + jnp.exp(-out))).astype(o_ref.dtype)

        if ragged:
            # Cheap unmasked path for every tile but the last; iota/cmp/select
            # only run once per image on the ragged edge tile.
            @pl.when(k < num_k - 1)
            def _():
                update_unmasked()

            @pl.when(k == num_k - 1)
            def _():
                update_masked()
                finalize()
        else:
            update_unmasked()

            @pl.when(k == num_k - 1)
            def _():
                finalize()

    cost = pl.CostEstimate(
        flops=2 * B * C * HW + 8 * B * hidden * C,
        transcendentals=B * C,
        bytes_accessed=B * C * HW * itemsize + 2 * hidden * C * 4 + B * C * itemsize,
    )

    out = pl.pallas_call(
        kernel,
        out_shape=jax.ShapeDtypeStruct((B, C, 1), x.dtype),
        grid_spec=pltpu.PrefetchScalarGridSpec(
            num_scalar_prefetch=0,
            grid=(B, num_k),
            in_specs=[
                pl.BlockSpec((1, C, T), lambda b, k: (b, 0, k)),
                pl.BlockSpec((hidden, C), lambda b, k: (0, 0)),
                pl.BlockSpec((C, hidden), lambda b, k: (0, 0)),
            ],
            out_specs=pl.BlockSpec((1, C, 1), lambda b, k: (b, 0, 0)),
            scratch_shapes=[
                pltpu.VMEM((C, 1), jnp.float32),   # running sum
                pltpu.VMEM((C, 1), jnp.float32),   # running max
            ],
        ),
        compiler_params=pltpu.CompilerParams(
            dimension_semantics=("parallel", "arbitrary"),
            vmem_limit_bytes=vmem_limit_bytes,
        ),
        cost_estimate=cost,
    )(x2, w1, w2)
    return out.reshape(B, C, 1, 1)


def _reference(x, w1, w2):
    """Pure-JAX mirror of the PyTorch forward (for correctness checks)."""
    B, C = x.shape[0], x.shape[1]
    xf = x.reshape(B, C, -1)
    avg = xf.mean(-1)                 # (B, C)
    mx = xf.max(-1)                   # (B, C)

    def mlp(p):
        return jnp.maximum(p @ w1.T, 0.0) @ w2.T

    return jax.nn.sigmoid(mlp(avg) + mlp(mx)).reshape(B, C, 1, 1)


if __name__ == "__main__":
    # Small shapes consistent with the module: in_planes=6, ratio=3 -> hidden=2
    B, C, H, W = 2, 6, 16, 16
    ratio = 3
    hidden = C // ratio

    key = jax.random.PRNGKey(0)
    kx, k1, k2, kx2, kx3 = jax.random.split(key, 5)
    x = jax.random.normal(kx, (B, C, H, W), dtype=jnp.float32)
    # PyTorch Conv2d 1x1 (bias=False) weights:
    #   fc1.weight (hidden, C, 1, 1) -> (hidden, C); fc2.weight (C, hidden, 1, 1) -> (C, hidden)
    w1 = jax.random.normal(k1, (hidden, C), dtype=jnp.float32) * 0.1
    w2 = jax.random.normal(k2, (C, hidden), dtype=jnp.float32) * 0.1

    # 1) Single-tile path (HW fits in one block).
    out = jax.block_until_ready(channel_attention(x, w1, w2))
    ref = _reference(x, w1, w2)
    assert out.shape == (B, C, 1, 1)
    assert jnp.allclose(out, ref, atol=1e-5, rtol=1e-5), "mismatch vs reference"

    # 2) Ragged tiled-reduction path: H=W=20 -> HW=400, forced T=128 ->
    #    num_k=4, last tile has 112 OOB lanes masked in BOTH sum and max
    #    (no host-side padding copy any more).
    xb = jax.random.normal(kx2, (B, C, 20, 20), dtype=jnp.float32)
    out2 = jax.block_until_ready(
        channel_attention(xb, w1, w2, tile_bytes=C * 128 * 4))
    ref2 = _reference(xb, w1, w2)
    assert jnp.allclose(out2, ref2, atol=1e-5, rtol=1e-5), "ragged-path mismatch"

    # 3) Exact-division multi-tile path: HW=512 with T=256 -> num_k=2, no mask.
    xc = jax.random.normal(kx3, (B, C, 16, 32), dtype=jnp.float32)
    out3 = jax.block_until_ready(
        channel_attention(xc, w1, w2, tile_bytes=C * 256 * 4))
    ref3 = _reference(xc, w1, w2)
    assert jnp.allclose(out3, ref3, atol=1e-5, rtol=1e-5), "exact-path mismatch"

    print("KERNEL_OK")
</pallas_src>

<mosaic_0001>
module attributes {stable_mosaic.version = 11 : i64} {
  func.func @kernel(%arg0: i32, %arg1: i32, %arg2: memref<1x6x256xf32, #tpu.memory_space<vmem>>, %arg3: memref<2x6xf32, #tpu.memory_space<vmem>>, %arg4: memref<6x2xf32, #tpu.memory_space<vmem>>, %arg5: memref<1x6x1xf32, #tpu.memory_space<vmem>>, %arg6: memref<6x1xf32, #tpu.memory_space<vmem>>, %arg7: memref<6x1xf32, #tpu.memory_space<vmem>>) attributes {dimension_semantics = [#tpu.dimension_semantics<parallel>, #tpu.dimension_semantics<arbitrary>], iteration_bounds = array<i64: 2, 1>, scalar_prefetch = 0 : i64, scratch_operands = 2 : i64, tpu.core_type = #tpu.core_type<tc>, window_params = [{transform_indices = @transform_0, window_bounds = array<i64: 1, 6, 256>}, {pipeline_mode = #tpu.pipeline_mode<synchronous>, transform_indices = @transform_1, window_bounds = array<i64: 2, 6>}, {pipeline_mode = #tpu.pipeline_mode<synchronous>, transform_indices = @transform_2, window_bounds = array<i64: 6, 2>}, {transform_indices = @transform_3, window_bounds = array<i64: 1, 6, 1>}]} {
    %c0_i32 = arith.constant 0 : i32
    %0 = arith.cmpi eq, %arg1, %c0_i32 : i32
    %1 = arith.extui %0 : i1 to i32
    %c0_i32_0 = arith.constant 0 : i32
    %2 = arith.cmpi ne, %1, %c0_i32_0 : i32
    scf.if %2 {
      %cst_14 = arith.constant 0.000000e+00 : f32
      %18 = vector.broadcast %cst_14 : f32 to vector<6x1xf32>
      %c0_15 = arith.constant 0 : index
      %c0_16 = arith.constant 0 : index
      %19 = vector.load %arg6[%c0_15, %c0_16] : memref<6x1xf32, #tpu.memory_space<vmem>>, vector<6x1xf32>
      tpu.vector_store %arg6[%c0_15, %c0_16], %18 {strides = array<i32>} : memref<6x1xf32, #tpu.memory_space<vmem>>, vector<6x1xf32>,
      %cst_17 = arith.constant 0xFF800000 : f32
      %20 = vector.broadcast %cst_17 : f32 to vector<6x1xf32>
      %c0_18 = arith.constant 0 : index
      %c0_19 = arith.constant 0 : index
      %21 = vector.load %arg7[%c0_18, %c0_19] : memref<6x1xf32, #tpu.memory_space<vmem>>, vector<6x1xf32>
      tpu.vector_store %arg7[%c0_18, %c0_19], %20 {strides = array<i32>} : memref<6x1xf32, #tpu.memory_space<vmem>>, vector<6x1xf32>,
    } else {
    }
    %c0 = arith.constant 0 : index
    %c0_1 = arith.constant 0 : index
    %c0_2 = arith.constant 0 : index
    %3 = vector.load %arg2[%c0, %c0_1, %c0_2] : memref<1x6x256xf32, #tpu.memory_space<vmem>>, vector<1x6x256xf32>
    %4 = vector.shape_cast %3 : vector<1x6x256xf32> to vector<6x256xf32>
    %c0_3 = arith.constant 0 : index
    %c0_4 = arith.constant 0 : index
    %5 = vector.load %arg6[%c0_3, %c0_4] : memref<6x1xf32, #tpu.memory_space<vmem>>, vector<6x1xf32>
    %cst = arith.constant dense<0.000000e+00> : vector<6xf32>
    %6 = vector.multi_reduction <add>, %4, %cst [1] : vector<6x256xf32> to vector<6xf32>
    %7 = vector.shape_cast %6 : vector<6xf32> to vector<6x1xf32>
    %8 = arith.addf %5, %7 : vector<6x1xf32>
    %c0_5 = arith.constant 0 : index
    %c0_6 = arith.constant 0 : index
    %9 = vector.load %arg6[%c0_5, %c0_6] : memref<6x1xf32, #tpu.memory_space<vmem>>, vector<6x1xf32>
    tpu.vector_store %arg6[%c0_5, %c0_6], %8 {strides = array<i32>} : memref<6x1xf32, #tpu.memory_space<vmem>>, vector<6x1xf32>,
    %c0_7 = arith.constant 0 : index
    %c0_8 = arith.constant 0 : index
    %10 = vector.load %arg7[%c0_7, %c0_8] : memref<6x1xf32, #tpu.memory_space<vmem>>, vector<6x1xf32>
    %cst_9 = arith.constant dense<0xFF800000> : vector<6xf32>
    %11 = vector.multi_reduction <maximumf>, %4, %cst_9 [1] : vector<6x256xf32> to vector<6xf32>
    %12 = vector.shape_cast %11 : vector<6xf32> to vector<6x1xf32>
    %13 = arith.maximumf %10, %12 : vector<6x1xf32>
    %c0_10 = arith.constant 0 : index
    %c0_11 = arith.constant 0 : index
    %14 = vector.load %arg7[%c0_10, %c0_11] : memref<6x1xf32, #tpu.memory_space<vmem>>, vector<6x1xf32>
    tpu.vector_store %arg7[%c0_10, %c0_11], %13 {strides = array<i32>} : memref<6x1xf32, #tpu.memory_space<vmem>>, vector<6x1xf32>,
    %c0_i32_12 = arith.constant 0 : i32
    %15 = arith.cmpi eq, %arg1, %c0_i32_12 : i32
    %16 = arith.extui %15 : i1 to i32
    %c0_i32_13 = arith.constant 0 : i32
    %17 = arith.cmpi ne, %16, %c0_i32_13 : i32
    scf.if %17 {
      %c0_14 = arith.constant 0 : index
      %c0_15 = arith.constant 0 : index
      %18 = vector.load %arg6[%c0_14, %c0_15] : memref<6x1xf32, #tpu.memory_space<vmem>>, vector<6x1xf32>
      %cst_16 = arith.constant 3.906250e-03 : f32
      %19 = vector.broadcast %cst_16 : f32 to vector<6x1xf32>
      %20 = arith.mulf %18, %19 : vector<6x1xf32>
      %c0_17 = arith.constant 0 : index
      %c0_18 = arith.constant 0 : index
      %21 = vector.load %arg7[%c0_17, %c0_18] : memref<6x1xf32, #tpu.memory_space<vmem>>, vector<6x1xf32>
      %22 = tpu.concatenate %20, %21 in 1 : vector<6x1xf32>, vector<6x1xf32> -> vector<6x2xf32>
      %c0_19 = arith.constant 0 : index
      %c0_20 = arith.constant 0 : index
      %23 = vector.load %arg3[%c0_19, %c0_20] : memref<2x6xf32, #tpu.memory_space<vmem>>, vector<2x6xf32>
      %c0_21 = arith.constant 0 : index
      %c0_22 = arith.constant 0 : index
      %24 = vector.load %arg4[%c0_21, %c0_22] : memref<6x2xf32, #tpu.memory_space<vmem>>, vector<6x2xf32>
      %cst_23 = arith.constant dense<0.000000e+00> : vector<2x2xf32>
      %25 = tpu.matmul %23, %22, %cst_23 {dimension_numbers = #tpu.dot_dimension_numbers<[1], [0], [0], [1], [0, 0, 1, 1], [], []>} : vector<2x6xf32>, vector<6x2xf32>, vector<2x2xf32> -> vector<2x2xf32>
      %cst_24 = arith.constant 0.000000e+00 : f32
      %26 = vector.broadcast %cst_24 : f32 to vector<2x2xf32>
      %27 = arith.maximumf %25, %26 : vector<2x2xf32>
      %cst_25 = arith.constant dense<0.000000e+00> : vector<6x2xf32>
      %28 = tpu.matmul %24, %27, %cst_25 {dimension_numbers = #tpu.dot_dimension_numbers<[1], [0], [0], [1], [0, 0, 1, 1], [], []>} : vector<6x2xf32>, vector<2x2xf32>, vector<6x2xf32> -> vector<6x2xf32>
      %29 = vector.extract_strided_slice %28 {offsets = [0, 0], sizes = [6, 1], strides = [1, 1]} : vector<6x2xf32> to vector<6x1xf32>
      %30 = vector.extract_strided_slice %28 {offsets = [0, 1], sizes = [6, 1], strides = [1, 1]} : vector<6x2xf32> to vector<6x1xf32>
      %31 = arith.addf %29, %30 : vector<6x1xf32>
      %cst_26 = arith.constant 0.000000e+00 : f32
      %32 = vector.broadcast %cst_26 : f32 to vector<6x1xf32>
      %33 = arith.subf %32, %31 : vector<6x1xf32>
      %34 = math.exp %33 : vector<6x1xf32>
      %cst_27 = arith.constant 1.000000e+00 : f32
      %35 = vector.broadcast %cst_27 : f32 to vector<6x1xf32>
      %36 = arith.addf %35, %34 : vector<6x1xf32>
      %cst_28 = arith.constant 1.000000e+00 : f32
      %37 = vector.broadcast %cst_28 : f32 to vector<6x1xf32>
      %38 = arith.divf %37, %36 : vector<6x1xf32>
      %c0_29 = arith.constant 0 : index
      %c0_30 = arith.constant 0 : index
      %c0_31 = arith.constant 0 : index
      %39 = vector.load %arg5[%c0_29, %c0_30, %c0_31] : memref<1x6x1xf32, #tpu.memory_space<vmem>>, vector<1x6x1xf32>
      %40 = vector.shape_cast %39 : vector<1x6x1xf32> to vector<6x1xf32>
      %41 = vector.shape_cast %38 : vector<6x1xf32> to vector<1x6x1xf32>
      tpu.vector_store %arg5[%c0_29, %c0_30, %c0_31], %41 {strides = array<i32>} : memref<1x6x1xf32, #tpu.memory_space<vmem>>, vector<1x6x1xf32>,
    } else {
    }
    return
  }
  func.func @transform_0(%arg0: i32, %arg1: i32) -> (i32, i32, i32) {
    %c0_i32 = arith.constant 0 : i32
    %c0_i32_0 = arith.constant 0 : i32
    return %arg0, %c0_i32, %arg1 : i32, i32, i32
  }
  func.func @transform_1(%arg0: i32, %arg1: i32) -> (i32, i32) {
    %c0_i32 = arith.constant 0 : i32
    %c0_i32_0 = arith.constant 0 : i32
    %c0_i32_1 = arith.constant 0 : i32
    return %c0_i32, %c0_i32_0 : i32, i32
  }
  func.func @transform_2(%arg0: i32, %arg1: i32) -> (i32, i32) {
    %c0_i32 = arith.constant 0 : i32
    %c0_i32_0 = arith.constant 0 : i32
    %c0_i32_1 = arith.constant 0 : i32
    return %c0_i32, %c0_i32_0 : i32, i32
  }
  func.func @transform_3(%arg0: i32, %arg1: i32) -> (i32, i32, i32) {
    %c0_i32 = arith.constant 0 : i32
    %c0_i32_0 = arith.constant 0 : i32
    %c0_i32_1 = arith.constant 0 : i32
    return %arg0, %c0_i32, %c0_i32_0 : i32, i32, i32
  }
}

</mosaic_0001>

<bundles_post_ra>
// kernel: tpu_custom_call.1
= control target key start
LH: loop header
LB: loop body
LE: loop exit
PB: predicated region body
PF: predicated region fallthrough
CT: control target
= control target key end

     0   :  { %s584_s12 = smov 0   ;;  %s586_s13 = smov 0   ;;  %s637_s0 = inlined_call_operand.vmem [shape: f32[2,6,256], index: 0, kind: input, shape index: {}]   ;;  %s638_s1 = inlined_call_operand.vmem [shape: f32[2,6], index: 1, kind: input, shape index: {}]   ;;  %s639_s2 = inlined_call_operand.vmem [shape: f32[6,2], index: 2, kind: input, shape index: {}]   ;;  %s640_s3 = inlined_call_operand.vmem [shape: f32[2,6,1], index: 3, kind: output, shape index: {}]  }
   0x1   :  { %s588_s14 = smov 0  }
   0x2 LB: > { %s25_s15 = sadd.s32 1, %s553_s13  ;;  %p477_p0 = scmp.ge.s32.totalorder %s557_s14, 1  ;;  %s557_s14 = sphi %s588_s14, %s13_s14   ;;  %s553_s13 = sphi %s586_s13, %s642_s13   ;;  %s549_s12 = sphi %s584_s12, %s641_s12  }
   0x3   : > { %p27_p1 = scmp.ge.s32.totalorder %s25_s15, 2  ;;  %p156_p2 = scmp.lt.s32.totalorder %s557_s14, 3 }
   0x5   : > { %s644_s15 = smov (%p27_p1, %s25_s15), 0  ;;  %p157_p3 = pnand %p477_p0, %p156_p2 }
   0x6   : > { %p184_p4 = scmp.lt.s32.totalorder (!%p157_p3), %s549_s12, 1  ;;  %s562_s20 = smov (!%p157_p3), 1  }
   0x7   : > { %160 = sbr.rel (%p157_p3) target bundleno = 825 (0x339), region = 32  ;;  %s563_s25 = smov (!%p157_p3), 127  }
   0xc   : > { %vm201_vm0 = vcmask 5120   ;;  %v559_v0 = vmov -inf   ;;  %s646_s12 = smov (!%p184_p4, %s549_s12), 1  ;;  %vm207_vm1 = vcmask 1045504   ;;  %v560_v9 = vmov 0.0  }
   0xd   : > { %203 = vst.msk [vmem:[#allocation3] sm:$0x3f] %vm201_vm0, %v559_v0  ;;  %s487_s16 = sshll.u32 %s646_s12, 4  ;;  %202 = vst.msk [vmem:[#allocation2] sm:$0x3f] %vm201_vm0, %v560_v9  ;;  %492 = vmatprep.subr.mxu0 %v560_v9  ;;  %497 = vmatprep.subr.mxu1 %v560_v9  ;;  %vm561_vm2 = vmmov 0  }
   0xe   : > { %s191_s19 = scalar_lea.vmem %s637_s0, %s487_s16  ;;  %494 = vmatprep.mubr.msk.f32.mxu0 %vm561_vm2, %v560_v9  ;;  %499 = vmatprep.mubr.msk.f32.mxu1 %vm561_vm2, %v560_v9  ;;  %vm234_vm3 = vcmask 7168   ;;  %v236_v20 = vld [vmem:[%s638_s1] sm:$0x3]  ;;  %vm238_vm4 = vcmask 48128   ;;  %vm320_vm5 = vcmask 1041408   ;;  %vm316_vm6 = vcmask 15360  }
   0xf   : > { %v204_v1 = vld [vmem:[%s191_s19] sm:$0x3f]  ;;  %v205_v2 = vld [vmem:[%s191_s19 + $0x8] sm:$0x3f]  ;;  %s480_s26 = sshll.u32 %s646_s12, 3 }
  0x10   : > { %v217_v3 = vsel %vm207_vm1, %v204_v1, -inf  ;;  %v218_v4 = vsel %vm207_vm1, %v205_v2, -inf  ;;  %v208_v5 = vsel %vm207_vm1, %v204_v1, 0.0  ;;  %v209_v6 = vsel %vm207_vm1, %v205_v2, 0.0  ;;  %v237_v24 = vld [vmem:[%s639_s2] sm:$0x3f]  ;;  %s196_s29 = scalar_lea.vmem %s640_s3, %s480_s26 }
  0x11   : > { %v219_v7 = vmax.f32 %v217_v3, %v218_v4  ;;  %v210_v8 = vadd.f32 %v209_v6, %v208_v5 }
  0x13   : > { %220 = vmax.xlane.f32.xlu0 %v219_v7 }
  0x14   : > { %v216_v10 = vld [vmem:[#allocation3] sm:$0x3f]  ;;  %v206_v13 = vld [vmem:[#allocation2] sm:$0x3f] }
  0x17   : > { %211 = vadd.xlane.f32.xlu0 %v210_v8 }
  0x9c   : > { %v221_v11 = vpop.xlane.xlu0 %220 }
  0x9d   : > { %v222_v12 = vmax.f32 %v216_v10, %v221_v11 }
  0x9f   : > { %223 = vst.msk [vmem:[#allocation3] sm:$0x3f] %vm201_vm0, %v222_v12 }
  0xa0   : > { %v212_v14 = vpop.xlane.xlu0 %211 }
  0xa1   : > { %v213_v15 = vadd.f32 %v212_v14, %v206_v13 }
  0xa3   : > { %215 = vst.msk [vmem:[#allocation2] sm:$0x3f] %vm201_vm0, %v213_v15 }
  0xa6   : > { %v229_v16 = vld [vmem:[#allocation3] sm:$0x3f] }
  0xa7   : > { %231 = vrot.lane.b32.xlu1 %v229_v16, %s562_s20 }
  0xaa   : > { %v227_v17 = vld [vmem:[#allocation2] sm:$0x3f] }
  0xab   : > { %v228_v18 = vmul.f32 0.00390625, %v227_v17 }
 0x119   : > { %v232_v19 = vpop.permute.xlu1 %231 }
 0x11a   : > { %v235_v21 = vsel %vm234_vm3, %v228_v18, %v232_v19 }
 0x11b   : > { %493 = vmatpush3.msk.msra.mxu0 %vm207_vm1, %v235_v21 }
 0x11c   : > { %495 = vmatmul.mubr.msk.f32.vlgmr.msra.gmra.mxu0 %vm238_vm4, %v236_v20 }
 0x1dc   : > { %v311_v22 = vpop.f32.mrf.mxu0 }
 0x1dd   : > { %v315_v23 = vmax.f32 %v311_v22, 0.0 }
 0x1de   : > { %v496_v25 = vpop.f32.mrf.mxu0 }
 0x1df   : > { %498 = vmatpush3.msk.msra.mxu1 %vm320_vm5, %v315_v23 }
 0x1e0   : > { %500 = vmatmul.mubr.msk.f32.vlgmr.msra.gmra.mxu1 %vm316_vm6, %v237_v24 }
 0x2a0   : > { %v390_v26 = vpop.f32.mrf.mxu1 }
 0x2a1   : > { %395 = vrot.lane.b32.xlu1 %v390_v26, %s563_s25 }
 0x2a2   : > { %v501_v27 = vpop.f32.mrf.mxu1 }
 0x313   : > { %v396_v28 = vpop.permute.xlu1 %395 }
 0x314   : > { %v398_v29 = vadd.f32 %v396_v28, %v390_v26 }
 0x316   : > { %v399_v30 = vsub.f32 0.0, %v398_v29 }
 0x318   : > { %v400_v31 = vmul.f32 1.442695, %v399_v30 }
 0x31a   : > { %531 = vpow2.f32 %v400_v31 }
 0x327   : > { %v532_v32 = vpop.eup %531 }
 0x328   : > { %v402_v33 = vadd.f32 1.0, %v532_v32 }
 0x32a   : > { %533 = vrcp.f32 %v402_v33 }
 0x337   : > { %v534_v34 = vpop.eup %533 }
 0x338   : > { %405 = vst.msk [vmem:[%s196_s29] sm:$0x3f] %vm201_vm0, %v534_v34 }
 0x339 PF: > { %s13_s14 = sadd.s32 1, %s557_s14   ;;  %s641_s12 = smov %s553_s13 }
 0x33a   : > { %p10_p5 = scmp.ge.s32.totalorder %s13_s14, 4   ;;  %s642_s13 = smov %s644_s15 }
 0x33c   :  { %12 = sbr.rel (!%p10_p5) target bundleno = 2 (0x2), region = 70 }

</bundles_post_ra>
